<compile_context>
chip_gen: v7x
topology: tpu7x:2x2x1
jax: 0.10.0
libtpu: 0.0.40
codegen_flags: <defaults>
</compile_context>

<pallas_src>
import functools

import jax
import jax.numpy as jnp
from jax.experimental import pallas as pl
from jax.experimental.pallas import tpu as pltpu


# ----------------------------------------------------------------------------
# Pallas kernel: fused [conv3x3 (in-kernel im2col) + folded BN + ReLU]
#                -> [conv3x3 as 9 roll-after-matmul partials] + bias + residual
# Everything channels-on-sublanes, flattened batch*spatial on lanes.
# ----------------------------------------------------------------------------
def _deform_kernel(x_ref, c_ref, w1_ref, w2_ref, o_ref, *, W, BHW, mm_dtype):
    # x_ref : (R8, BHW)  f32       rows = [x(C), gx, gy, ones, zeros...]
    # c_ref : (12, BHW)  f32       rows 0:9 border masks, rows 9:12 conv2 bias
    # w1_ref: (OC, 9*R8) mm_dtype  BN scale folded, BN bias on the ones column
    # w2_ref: (9, 3, OC) mm_dtype  per-tap conv2 weights (transposed)
    # o_ref : (3, BHW)   f32
    xc = x_ref[...]                                            # (R8, BHW) f32

    # ---- conv1: 9 rolled + masked taps built in-register, one MXU matmul ---
    taps = []
    for t in range(9):
        dy, dx = t // 3 - 1, t % 3 - 1
        s = dy * W + dx
        if s == 0:
            taps.append(xc)                                    # center tap
        else:
            rolled = pltpu.roll(xc, shift=(-s) % BHW, axis=1)  # XLU lane rotate
            taps.append(rolled * c_ref[t:t + 1, :])            # zero-pad mask
    rhs = jnp.concatenate(taps, axis=0).astype(mm_dtype)       # (9*R8, BHW)
    h = jnp.dot(w1_ref[...], rhs, preferred_element_type=jnp.float32)
    h = jnp.maximum(h, 0.0).astype(mm_dtype)                   # (OC, BHW)

    # ---- conv2: 9 small matmuls, roll-after-matmul, f32 accumulation -------
    acc = x_ref[0:3, :] + c_ref[9:12, :]                       # residual + b2
    for t in range(9):
        dy, dx = t // 3 - 1, t % 3 - 1
        s = dy * W + dx
        y = jnp.dot(w2_ref[t], h, preferred_element_type=jnp.float32)  # (3,BHW)
        if s == 0:
            acc = acc + y
        else:
            acc = acc + pltpu.roll(y, shift=(-s) % BHW, axis=1) * c_ref[t:t + 1, :]
    o_ref[...] = acc


def deform_block_pallas(x_nchw, params, *, matmul_dtype=jnp.bfloat16):
    """x_nchw: (B, C, H, W) float32.  Returns (B, 3, H, W) float32."""
    B, C, H, W = x_nchw.shape
    Cin = C + 2
    HW = H * W
    BHW = B * HW
    OC = params["w1_hwio"].shape[-1]
    R8 = ((Cin + 1 + 7) // 8) * 8          # input-slab rows, padded to 8

    # ---- tiny wrapper glue (O(10 KB)): input slab, consts, folded weights ---
    coords = spatial_map(H, W).reshape(2, HW)                         # (2, HW)
    x_cb = jnp.transpose(x_nchw.reshape(B, C, HW), (1, 0, 2)).reshape(C, BHW)
    slab = jnp.concatenate(
        [x_cb,
         jnp.tile(coords, (1, B)),                                    # (2, BHW)
         jnp.ones((1, BHW), jnp.float32),                             # bias row
         jnp.zeros((R8 - Cin - 1, BHW), jnp.float32)], axis=0)        # (R8, BHW)

    # Border masks (one per 3x3 tap) tiled over batch; also zero any lane-roll
    # leakage across the batch boundary.  conv2 bias broadcast rides along.
    yg, xg = jnp.meshgrid(jnp.arange(H), jnp.arange(W), indexing="ij")
    masks = []
    for ky in range(3):
        for kx in range(3):
            dy, dx = ky - 1, kx - 1
            ok = ((yg + dy >= 0) & (yg + dy < H) &
                  (xg + dx >= 0) & (xg + dx < W)).reshape(HW)
            masks.append(jnp.tile(ok.astype(jnp.float32), B))
    consts = jnp.concatenate(
        [jnp.stack(masks, axis=0),                                     # (9, BHW)
         jnp.broadcast_to(params["b2"].reshape(3, 1), (3, BHW))], axis=0)

    # Fold BN (inference) into conv1 weights; BN bias goes on the ones row of
    # the center tap only (the ones row gets masked on the other taps).
    bn_scale = params["bn_gamma"] / jnp.sqrt(params["bn_var"] + 1e-5)
    bn_bias = params["bn_beta"] - params["bn_mean"] * bn_scale
    w1 = params["w1_hwio"] * bn_scale                                  # (3,3,Cin,OC)
    w1_blocks = []
    for t in range(9):
        ky, kx = divmod(t, 3)
        bias_col = bn_bias if t == 4 else jnp.zeros((OC,), jnp.float32)
        w1_blocks.append(jnp.concatenate(
            [w1[ky, kx].T,                                             # (OC, Cin)
             bias_col[:, None],
             jnp.zeros((OC, R8 - Cin - 1), jnp.float32)], axis=1))
    w1_mat = jnp.concatenate(w1_blocks, axis=1).astype(matmul_dtype)   # (OC, 9*R8)

    w2_stack = jnp.stack([params["w2_hwio"][ky, kx].T                  # (3, OC)
                          for ky in range(3) for kx in range(3)],
                         axis=0).astype(matmul_dtype)                  # (9, 3, OC)

    kernel = functools.partial(_deform_kernel, W=W, BHW=BHW, mm_dtype=matmul_dtype)

    itemsize = jnp.dtype(matmul_dtype).itemsize
    flops = 2 * BHW * (OC * 9 * R8 + 9 * 3 * OC)
    bytes_accessed = ((slab.size + consts.size + 3 * BHW) * 4
                      + (w1_mat.size + w2_stack.size) * itemsize)

    out = pl.pallas_call(
        kernel,
        out_shape=jax.ShapeDtypeStruct((3, BHW), jnp.float32),
        grid=(1,),
        in_specs=[
            pl.BlockSpec((R8, BHW), lambda i: (0, 0)),          # input slab
            pl.BlockSpec((12, BHW), lambda i: (0, 0)),          # masks + b2
            pl.BlockSpec((OC, 9 * R8), lambda i: (0, 0)),       # conv1 (BN folded)
            pl.BlockSpec((9, 3, OC), lambda i: (0, 0, 0)),      # conv2 taps
        ],
        out_specs=pl.BlockSpec((3, BHW), lambda i: (0, 0)),
        compiler_params=pltpu.CompilerParams(
            dimension_semantics=("arbitrary",)),
        cost_estimate=pl.CostEstimate(flops=int(flops), transcendentals=0,
                                      bytes_accessed=int(bytes_accessed)),
    )(slab, consts, w1_mat, w2_stack)

    # (3, B*H*W) -> (B, 3, H, W)
    return jnp.transpose(out.reshape(3, B, H, W), (1, 0, 2, 3))


# ----------------------------------------------------------------------------
# Helpers: coordinate map, parameter init, pure-JAX reference.
# ----------------------------------------------------------------------------
def spatial_map(H, W):
    """Normalized coordinate grid, shape (2, H, W), values in [-1, 1]."""
    ys = jnp.linspace(-1.0, 1.0, H, dtype=jnp.float32)
    xs = jnp.linspace(-1.0, 1.0, W, dtype=jnp.float32)
    gy, gx = jnp.meshgrid(ys, xs, indexing="ij")
    return jnp.stack([gx, gy], axis=0)


def init_params(key, input_channels, output_channels, filter_size=3):
    Cin = input_channels + 2
    OC = output_channels
    k = jax.random.split(key, 6)
    return {
        # HWIO layouts (kh, kw, in, out)
        "w1_hwio": 0.1 * jax.random.normal(k[0], (filter_size, filter_size, Cin, OC), jnp.float32),
        "w2_hwio": 0.1 * jax.random.normal(k[1], (filter_size, filter_size, OC, 3), jnp.float32),
        "b2": 0.1 * jax.random.normal(k[2], (3,), jnp.float32),
        "bn_gamma": 1.0 + 0.1 * jax.random.normal(k[3], (OC,), jnp.float32),
        "bn_beta": 0.1 * jax.random.normal(k[4], (OC,), jnp.float32),
        "bn_mean": 0.1 * jax.random.normal(k[5], (OC,), jnp.float32),
        "bn_var": jnp.ones((OC,), jnp.float32),
    }


def deform_block_reference(x_nchw, params):
    """Pure-JAX (XLA conv) reference of the same forward pass, for checking."""
    B, C, H, W = x_nchw.shape
    coords = spatial_map(H, W)
    x_cat = jnp.concatenate(
        [x_nchw, jnp.broadcast_to(coords[None], (B, 2, H, W))], axis=1)
    xh = jnp.transpose(x_cat, (0, 2, 3, 1))                      # NHWC
    dn = ("NHWC", "HWIO", "NHWC")
    h = jax.lax.conv_general_dilated(xh, params["w1_hwio"], (1, 1), "SAME",
                                     dimension_numbers=dn)
    scale = params["bn_gamma"] / jnp.sqrt(params["bn_var"] + 1e-5)
    bias = params["bn_beta"] - params["bn_mean"] * scale
    h = jnp.maximum(h * scale + bias, 0.0)
    y = jax.lax.conv_general_dilated(h, params["w2_hwio"], (1, 1), "SAME",
                                     dimension_numbers=dn) + params["b2"]
    out = y + xh[..., :3]
    return jnp.transpose(out, (0, 3, 1, 2))


# ----------------------------------------------------------------------------
if __name__ == "__main__":
    B, C, H, W = 2, 4, 16, 16
    OC = 32

    key = jax.random.PRNGKey(0)
    kx_, kp = jax.random.split(key)
    x = jax.random.normal(kx_, (B, C, H, W), jnp.float32)
    params = init_params(kp, input_channels=C, output_channels=OC)

    ref = deform_block_reference(x, params)

    # f32 MXU path: tight structural check.
    fwd_f32 = jax.jit(functools.partial(deform_block_pallas,
                                        matmul_dtype=jnp.float32))
    out_f32 = jax.block_until_ready(fwd_f32(x, params))
    assert out_f32.shape == (B, 3, H, W), out_f32.shape
    assert jnp.allclose(out_f32, ref, atol=1e-3, rtol=1e-3), (
        float(jnp.max(jnp.abs(out_f32 - ref))))

    # Default bf16 MXU path (native full-rate MXU format): loose tolerance.
    fwd_bf16 = jax.jit(functools.partial(deform_block_pallas,
                                         matmul_dtype=jnp.bfloat16))
    out = jax.block_until_ready(fwd_bf16(x, params))
    assert out.shape == (B, 3, H, W), out.shape
    assert jnp.allclose(out, ref, atol=5e-2, rtol=5e-2), (
        float(jnp.max(jnp.abs(out - ref))))

    print("KERNEL_OK")
</pallas_src>

<mosaic_0001>
module attributes {stable_mosaic.version = 11 : i64} {
  func.func @_deform_kernel(%arg0: i32, %arg1: memref<8x512xf32, #tpu.memory_space<vmem>>, %arg2: memref<12x512xf32, #tpu.memory_space<vmem>>, %arg3: memref<32x72xf32, #tpu.memory_space<vmem>>, %arg4: memref<9x3x32xf32, #tpu.memory_space<vmem>>, %arg5: memref<3x512xf32, #tpu.memory_space<vmem>>) attributes {dimension_semantics = [#tpu.dimension_semantics<arbitrary>], iteration_bounds = array<i64: 1>, scalar_prefetch = 0 : i64, scratch_operands = 0 : i64, tpu.core_type = #tpu.core_type<tc>, window_params = [{pipeline_mode = #tpu.pipeline_mode<synchronous>, transform_indices = @transform_0, window_bounds = array<i64: 8, 512>}, {pipeline_mode = #tpu.pipeline_mode<synchronous>, transform_indices = @transform_1, window_bounds = array<i64: 12, 512>}, {pipeline_mode = #tpu.pipeline_mode<synchronous>, transform_indices = @transform_2, window_bounds = array<i64: 32, 72>}, {pipeline_mode = #tpu.pipeline_mode<synchronous>, transform_indices = @transform_3, window_bounds = array<i64: 9, 3, 32>}, {pipeline_mode = #tpu.pipeline_mode<synchronous>, transform_indices = @transform_4, window_bounds = array<i64: 3, 512>}]} {
    %c0 = arith.constant 0 : index
    %c0_0 = arith.constant 0 : index
    %0 = vector.load %arg1[%c0, %c0_0] : memref<8x512xf32, #tpu.memory_space<vmem>>, vector<8x512xf32>
    %c17_i32 = arith.constant 17 : i32
    %1 = tpu.dynamic_rotate %0 by %c17_i32 dim 1 : vector<8x512xf32>, i32 -> vector<8x512xf32>
    %c0_1 = arith.constant 0 : index
    %c0_2 = arith.constant 0 : index
    %2 = vector.load %arg2[%c0_1, %c0_2] : memref<12x512xf32, #tpu.memory_space<vmem>>, vector<1x512xf32>
    %3 = vector.broadcast %2 : vector<1x512xf32> to vector<8x512xf32>
    %4 = arith.mulf %1, %3 : vector<8x512xf32>
    %c16_i32 = arith.constant 16 : i32
    %5 = tpu.dynamic_rotate %0 by %c16_i32 dim 1 : vector<8x512xf32>, i32 -> vector<8x512xf32>
    %c1 = arith.constant 1 : index
    %c0_3 = arith.constant 0 : index
    %6 = vector.load %arg2[%c1, %c0_3] : memref<12x512xf32, #tpu.memory_space<vmem>>, vector<1x512xf32>
    %7 = vector.broadcast %6 : vector<1x512xf32> to vector<8x512xf32>
    %8 = arith.mulf %5, %7 : vector<8x512xf32>
    %c15_i32 = arith.constant 15 : i32
    %9 = tpu.dynamic_rotate %0 by %c15_i32 dim 1 : vector<8x512xf32>, i32 -> vector<8x512xf32>
    %c2 = arith.constant 2 : index
    %c0_4 = arith.constant 0 : index
    %10 = vector.load %arg2[%c2, %c0_4] : memref<12x512xf32, #tpu.memory_space<vmem>>, vector<1x512xf32>
    %11 = vector.broadcast %10 : vector<1x512xf32> to vector<8x512xf32>
    %12 = arith.mulf %9, %11 : vector<8x512xf32>
    %c1_i32 = arith.constant 1 : i32
    %13 = tpu.dynamic_rotate %0 by %c1_i32 dim 1 : vector<8x512xf32>, i32 -> vector<8x512xf32>
    %c3 = arith.constant 3 : index
    %c0_5 = arith.constant 0 : index
    %14 = vector.load %arg2[%c3, %c0_5] : memref<12x512xf32, #tpu.memory_space<vmem>>, vector<1x512xf32>
    %15 = vector.broadcast %14 : vector<1x512xf32> to vector<8x512xf32>
    %16 = arith.mulf %13, %15 : vector<8x512xf32>
    %c511_i32 = arith.constant 511 : i32
    %17 = tpu.dynamic_rotate %0 by %c511_i32 dim 1 : vector<8x512xf32>, i32 -> vector<8x512xf32>
    %c5 = arith.constant 5 : index
    %c0_6 = arith.constant 0 : index
    %18 = vector.load %arg2[%c5, %c0_6] : memref<12x512xf32, #tpu.memory_space<vmem>>, vector<1x512xf32>
    %19 = vector.broadcast %18 : vector<1x512xf32> to vector<8x512xf32>
    %20 = arith.mulf %17, %19 : vector<8x512xf32>
    %c497_i32 = arith.constant 497 : i32
    %21 = tpu.dynamic_rotate %0 by %c497_i32 dim 1 : vector<8x512xf32>, i32 -> vector<8x512xf32>
    %c6 = arith.constant 6 : index
    %c0_7 = arith.constant 0 : index
    %22 = vector.load %arg2[%c6, %c0_7] : memref<12x512xf32, #tpu.memory_space<vmem>>, vector<1x512xf32>
    %23 = vector.broadcast %22 : vector<1x512xf32> to vector<8x512xf32>
    %24 = arith.mulf %21, %23 : vector<8x512xf32>
    %c496_i32 = arith.constant 496 : i32
    %25 = tpu.dynamic_rotate %0 by %c496_i32 dim 1 : vector<8x512xf32>, i32 -> vector<8x512xf32>
    %c7 = arith.constant 7 : index
    %c0_8 = arith.constant 0 : index
    %26 = vector.load %arg2[%c7, %c0_8] : memref<12x512xf32, #tpu.memory_space<vmem>>, vector<1x512xf32>
    %27 = vector.broadcast %26 : vector<1x512xf32> to vector<8x512xf32>
    %28 = arith.mulf %25, %27 : vector<8x512xf32>
    %c495_i32 = arith.constant 495 : i32
    %29 = tpu.dynamic_rotate %0 by %c495_i32 dim 1 : vector<8x512xf32>, i32 -> vector<8x512xf32>
    %c8 = arith.constant 8 : index
    %c0_9 = arith.constant 0 : index
    %30 = vector.load %arg2[%c8, %c0_9] : memref<12x512xf32, #tpu.memory_space<vmem>>, vector<1x512xf32>
    %31 = vector.broadcast %30 : vector<1x512xf32> to vector<8x512xf32>
    %32 = arith.mulf %29, %31 : vector<8x512xf32>
    %33 = tpu.concatenate %4, %8, %12, %16, %0, %20, %24, %28, %32 in 0 : vector<8x512xf32>, vector<8x512xf32>, vector<8x512xf32>, vector<8x512xf32>, vector<8x512xf32>, vector<8x512xf32>, vector<8x512xf32>, vector<8x512xf32>, vector<8x512xf32> -> vector<72x512xf32>
    %c0_10 = arith.constant 0 : index
    %c0_11 = arith.constant 0 : index
    %34 = vector.load %arg3[%c0_10, %c0_11] : memref<32x72xf32, #tpu.memory_space<vmem>>, vector<32x72xf32>
    %cst = arith.constant dense<0.000000e+00> : vector<32x512xf32>
    %35 = tpu.matmul %34, %33, %cst {dimension_numbers = #tpu.dot_dimension_numbers<[1], [0], [0], [1], [0, 0, 1, 1], [], []>} : vector<32x72xf32>, vector<72x512xf32>, vector<32x512xf32> -> vector<32x512xf32>
    %cst_12 = arith.constant 0.000000e+00 : f32
    %36 = vector.broadcast %cst_12 : f32 to vector<32x512xf32>
    %37 = arith.maximumf %35, %36 : vector<32x512xf32>
    %c0_13 = arith.constant 0 : index
    %c0_14 = arith.constant 0 : index
    %38 = vector.load %arg1[%c0_13, %c0_14] : memref<8x512xf32, #tpu.memory_space<vmem>>, vector<3x512xf32>
    %c9 = arith.constant 9 : index
    %c0_15 = arith.constant 0 : index
    %39 = vector.load %arg2[%c9, %c0_15] : memref<12x512xf32, #tpu.memory_space<vmem>>, vector<3x512xf32>
    %40 = arith.addf %38, %39 : vector<3x512xf32>
    %c0_16 = arith.constant 0 : index
    %c0_17 = arith.constant 0 : index
    %c0_18 = arith.constant 0 : index
    %41 = vector.load %arg4[%c0_16, %c0_17, %c0_18] : memref<9x3x32xf32, #tpu.memory_space<vmem>>, vector<1x3x32xf32>
    %42 = vector.shape_cast %41 : vector<1x3x32xf32> to vector<3x32xf32>
    %cst_19 = arith.constant dense<0.000000e+00> : vector<3x512xf32>
    %43 = tpu.matmul %42, %37, %cst_19 {dimension_numbers = #tpu.dot_dimension_numbers<[1], [0], [0], [1], [0, 0, 1, 1], [], []>} : vector<3x32xf32>, vector<32x512xf32>, vector<3x512xf32> -> vector<3x512xf32>
    %c17_i32_20 = arith.constant 17 : i32
    %44 = tpu.dynamic_rotate %43 by %c17_i32_20 dim 1 : vector<3x512xf32>, i32 -> vector<3x512xf32>
    %c0_21 = arith.constant 0 : index
    %c0_22 = arith.constant 0 : index
    %45 = vector.load %arg2[%c0_21, %c0_22] : memref<12x512xf32, #tpu.memory_space<vmem>>, vector<1x512xf32>
    %46 = vector.broadcast %45 : vector<1x512xf32> to vector<3x512xf32>
    %47 = arith.mulf %44, %46 : vector<3x512xf32>
    %48 = arith.addf %40, %47 : vector<3x512xf32>
    %c1_23 = arith.constant 1 : index
    %c0_24 = arith.constant 0 : index
    %c0_25 = arith.constant 0 : index
    %49 = vector.load %arg4[%c1_23, %c0_24, %c0_25] : memref<9x3x32xf32, #tpu.memory_space<vmem>>, vector<1x3x32xf32>
    %50 = vector.shape_cast %49 : vector<1x3x32xf32> to vector<3x32xf32>
    %cst_26 = arith.constant dense<0.000000e+00> : vector<3x512xf32>
    %51 = tpu.matmul %50, %37, %cst_26 {dimension_numbers = #tpu.dot_dimension_numbers<[1], [0], [0], [1], [0, 0, 1, 1], [], []>} : vector<3x32xf32>, vector<32x512xf32>, vector<3x512xf32> -> vector<3x512xf32>
    %c16_i32_27 = arith.constant 16 : i32
    %52 = tpu.dynamic_rotate %51 by %c16_i32_27 dim 1 : vector<3x512xf32>, i32 -> vector<3x512xf32>
    %c1_28 = arith.constant 1 : index
    %c0_29 = arith.constant 0 : index
    %53 = vector.load %arg2[%c1_28, %c0_29] : memref<12x512xf32, #tpu.memory_space<vmem>>, vector<1x512xf32>
    %54 = vector.broadcast %53 : vector<1x512xf32> to vector<3x512xf32>
    %55 = arith.mulf %52, %54 : vector<3x512xf32>
    %56 = arith.addf %48, %55 : vector<3x512xf32>
    %c2_30 = arith.constant 2 : index
    %c0_31 = arith.constant 0 : index
    %c0_32 = arith.constant 0 : index
    %57 = vector.load %arg4[%c2_30, %c0_31, %c0_32] : memref<9x3x32xf32, #tpu.memory_space<vmem>>, vector<1x3x32xf32>
    %58 = vector.shape_cast %57 : vector<1x3x32xf32> to vector<3x32xf32>
    %cst_33 = arith.constant dense<0.000000e+00> : vector<3x512xf32>
    %59 = tpu.matmul %58, %37, %cst_33 {dimension_numbers = #tpu.dot_dimension_numbers<[1], [0], [0], [1], [0, 0, 1, 1], [], []>} : vector<3x32xf32>, vector<32x512xf32>, vector<3x512xf32> -> vector<3x512xf32>
    %c15_i32_34 = arith.constant 15 : i32
    %60 = tpu.dynamic_rotate %59 by %c15_i32_34 dim 1 : vector<3x512xf32>, i32 -> vector<3x512xf32>
    %c2_35 = arith.constant 2 : index
    %c0_36 = arith.constant 0 : index
    %61 = vector.load %arg2[%c2_35, %c0_36] : memref<12x512xf32, #tpu.memory_space<vmem>>, vector<1x512xf32>
    %62 = vector.broadcast %61 : vector<1x512xf32> to vector<3x512xf32>
    %63 = arith.mulf %60, %62 : vector<3x512xf32>
    %64 = arith.addf %56, %63 : vector<3x512xf32>
    %c3_37 = arith.constant 3 : index
    %c0_38 = arith.constant 0 : index
    %c0_39 = arith.constant 0 : index
    %65 = vector.load %arg4[%c3_37, %c0_38, %c0_39] : memref<9x3x32xf32, #tpu.memory_space<vmem>>, vector<1x3x32xf32>
    %66 = vector.shape_cast %65 : vector<1x3x32xf32> to vector<3x32xf32>
    %cst_40 = arith.constant dense<0.000000e+00> : vector<3x512xf32>
    %67 = tpu.matmul %66, %37, %cst_40 {dimension_numbers = #tpu.dot_dimension_numbers<[1], [0], [0], [1], [0, 0, 1, 1], [], []>} : vector<3x32xf32>, vector<32x512xf32>, vector<3x512xf32> -> vector<3x512xf32>
    %c1_i32_41 = arith.constant 1 : i32
    %68 = tpu.dynamic_rotate %67 by %c1_i32_41 dim 1 : vector<3x512xf32>, i32 -> vector<3x512xf32>
    %c3_42 = arith.constant 3 : index
    %c0_43 = arith.constant 0 : index
    %69 = vector.load %arg2[%c3_42, %c0_43] : memref<12x512xf32, #tpu.memory_space<vmem>>, vector<1x512xf32>
    %70 = vector.broadcast %69 : vector<1x512xf32> to vector<3x512xf32>
    %71 = arith.mulf %68, %70 : vector<3x512xf32>
    %72 = arith.addf %64, %71 : vector<3x512xf32>
    %c4 = arith.constant 4 : index
    %c0_44 = arith.constant 0 : index
    %c0_45 = arith.constant 0 : index
    %73 = vector.load %arg4[%c4, %c0_44, %c0_45] : memref<9x3x32xf32, #tpu.memory_space<vmem>>, vector<1x3x32xf32>
    %74 = vector.shape_cast %73 : vector<1x3x32xf32> to vector<3x32xf32>
    %cst_46 = arith.constant dense<0.000000e+00> : vector<3x512xf32>
    %75 = tpu.matmul %74, %37, %cst_46 {dimension_numbers = #tpu.dot_dimension_numbers<[1], [0], [0], [1], [0, 0, 1, 1], [], []>} : vector<3x32xf32>, vector<32x512xf32>, vector<3x512xf32> -> vector<3x512xf32>
    %76 = arith.addf %72, %75 : vector<3x512xf32>
    %c5_47 = arith.constant 5 : index
    %c0_48 = arith.constant 0 : index
    %c0_49 = arith.constant 0 : index
    %77 = vector.load %arg4[%c5_47, %c0_48, %c0_49] : memref<9x3x32xf32, #tpu.memory_space<vmem>>, vector<1x3x32xf32>
    %78 = vector.shape_cast %77 : vector<1x3x32xf32> to vector<3x32xf32>
    %cst_50 = arith.constant dense<0.000000e+00> : vector<3x512xf32>
    %79 = tpu.matmul %78, %37, %cst_50 {dimension_numbers = #tpu.dot_dimension_numbers<[1], [0], [0], [1], [0, 0, 1, 1], [], []>} : vector<3x32xf32>, vector<32x512xf32>, vector<3x512xf32> -> vector<3x512xf32>
    %c511_i32_51 = arith.constant 511 : i32
    %80 = tpu.dynamic_rotate %79 by %c511_i32_51 dim 1 : vector<3x512xf32>, i32 -> vector<3x512xf32>
    %c5_52 = arith.constant 5 : index
    %c0_53 = arith.constant 0 : index
    %81 = vector.load %arg2[%c5_52, %c0_53] : memref<12x512xf32, #tpu.memory_space<vmem>>, vector<1x512xf32>
    %82 = vector.broadcast %81 : vector<1x512xf32> to vector<3x512xf32>
    %83 = arith.mulf %80, %82 : vector<3x512xf32>
    %84 = arith.addf %76, %83 : vector<3x512xf32>
    %c6_54 = arith.constant 6 : index
    %c0_55 = arith.constant 0 : index
    %c0_56 = arith.constant 0 : index
    %85 = vector.load %arg4[%c6_54, %c0_55, %c0_56] : memref<9x3x32xf32, #tpu.memory_space<vmem>>, vector<1x3x32xf32>
    %86 = vector.shape_cast %85 : vector<1x3x32xf32> to vector<3x32xf32>
    %cst_57 = arith.constant dense<0.000000e+00> : vector<3x512xf32>
    %87 = tpu.matmul %86, %37, %cst_57 {dimension_numbers = #tpu.dot_dimension_numbers<[1], [0], [0], [1], [0, 0, 1, 1], [], []>} : vector<3x32xf32>, vector<32x512xf32>, vector<3x512xf32> -> vector<3x512xf32>
    %c497_i32_58 = arith.constant 497 : i32
    %88 = tpu.dynamic_rotate %87 by %c497_i32_58 dim 1 : vector<3x512xf32>, i32 -> vector<3x512xf32>
    %c6_59 = arith.constant 6 : index
    %c0_60 = arith.constant 0 : index
    %89 = vector.load %arg2[%c6_59, %c0_60] : memref<12x512xf32, #tpu.memory_space<vmem>>, vector<1x512xf32>
    %90 = vector.broadcast %89 : vector<1x512xf32> to vector<3x512xf32>
    %91 = arith.mulf %88, %90 : vector<3x512xf32>
    %92 = arith.addf %84, %91 : vector<3x512xf32>
    %c7_61 = arith.constant 7 : index
    %c0_62 = arith.constant 0 : index
    %c0_63 = arith.constant 0 : index
    %93 = vector.load %arg4[%c7_61, %c0_62, %c0_63] : memref<9x3x32xf32, #tpu.memory_space<vmem>>, vector<1x3x32xf32>
    %94 = vector.shape_cast %93 : vector<1x3x32xf32> to vector<3x32xf32>
    %cst_64 = arith.constant dense<0.000000e+00> : vector<3x512xf32>
    %95 = tpu.matmul %94, %37, %cst_64 {dimension_numbers = #tpu.dot_dimension_numbers<[1], [0], [0], [1], [0, 0, 1, 1], [], []>} : vector<3x32xf32>, vector<32x512xf32>, vector<3x512xf32> -> vector<3x512xf32>
    %c496_i32_65 = arith.constant 496 : i32
    %96 = tpu.dynamic_rotate %95 by %c496_i32_65 dim 1 : vector<3x512xf32>, i32 -> vector<3x512xf32>
    %c7_66 = arith.constant 7 : index
    %c0_67 = arith.constant 0 : index
    %97 = vector.load %arg2[%c7_66, %c0_67] : memref<12x512xf32, #tpu.memory_space<vmem>>, vector<1x512xf32>
    %98 = vector.broadcast %97 : vector<1x512xf32> to vector<3x512xf32>
    %99 = arith.mulf %96, %98 : vector<3x512xf32>
    %100 = arith.addf %92, %99 : vector<3x512xf32>
    %c8_68 = arith.constant 8 : index
    %c0_69 = arith.constant 0 : index
    %c0_70 = arith.constant 0 : index
    %101 = vector.load %arg4[%c8_68, %c0_69, %c0_70] : memref<9x3x32xf32, #tpu.memory_space<vmem>>, vector<1x3x32xf32>
    %102 = vector.shape_cast %101 : vector<1x3x32xf32> to vector<3x32xf32>
    %cst_71 = arith.constant dense<0.000000e+00> : vector<3x512xf32>
    %103 = tpu.matmul %102, %37, %cst_71 {dimension_numbers = #tpu.dot_dimension_numbers<[1], [0], [0], [1], [0, 0, 1, 1], [], []>} : vector<3x32xf32>, vector<32x512xf32>, vector<3x512xf32> -> vector<3x512xf32>
    %c495_i32_72 = arith.constant 495 : i32
    %104 = tpu.dynamic_rotate %103 by %c495_i32_72 dim 1 : vector<3x512xf32>, i32 -> vector<3x512xf32>
    %c8_73 = arith.constant 8 : index
    %c0_74 = arith.constant 0 : index
    %105 = vector.load %arg2[%c8_73, %c0_74] : memref<12x512xf32, #tpu.memory_space<vmem>>, vector<1x512xf32>
    %106 = vector.broadcast %105 : vector<1x512xf32> to vector<3x512xf32>
    %107 = arith.mulf %104, %106 : vector<3x512xf32>
    %108 = arith.addf %100, %107 : vector<3x512xf32>
    %c0_75 = arith.constant 0 : index
    %c0_76 = arith.constant 0 : index
    %109 = vector.load %arg5[%c0_75, %c0_76] : memref<3x512xf32, #tpu.memory_space<vmem>>, vector<3x512xf32>
    tpu.vector_store %arg5[%c0_75, %c0_76], %108 {strides = array<i32>} : memref<3x512xf32, #tpu.memory_space<vmem>>, vector<3x512xf32>,
    return
  }
  func.func @transform_0(%arg0: i32) -> (i32, i32) {
    %c0_i32 = arith.constant 0 : i32
    %c0_i32_0 = arith.constant 0 : i32
    %c0_i32_1 = arith.constant 0 : i32
    return %c0_i32, %c0_i32_0 : i32, i32
  }
  func.func @transform_1(%arg0: i32) -> (i32, i32) {
    %c0_i32 = arith.constant 0 : i32
    %c0_i32_0 = arith.constant 0 : i32
    %c0_i32_1 = arith.constant 0 : i32
    return %c0_i32, %c0_i32_0 : i32, i32
  }
  func.func @transform_2(%arg0: i32) -> (i32, i32) {
    %c0_i32 = arith.constant 0 : i32
    %c0_i32_0 = arith.constant 0 : i32
    %c0_i32_1 = arith.constant 0 : i32
    return %c0_i32, %c0_i32_0 : i32, i32
  }
  func.func @transform_3(%arg0: i32) -> (i32, i32, i32) {
    %c0_i32 = arith.constant 0 : i32
    %c0_i32_0 = arith.constant 0 : i32
    %c0_i32_1 = arith.constant 0 : i32
    %c0_i32_2 = arith.constant 0 : i32
    return %c0_i32, %c0_i32_0, %c0_i32_1 : i32, i32, i32
  }
  func.func @transform_4(%arg0: i32) -> (i32, i32) {
    %c0_i32 = arith.constant 0 : i32
    %c0_i32_0 = arith.constant 0 : i32
    %c0_i32_1 = arith.constant 0 : i32
    return %c0_i32, %c0_i32_0 : i32, i32
  }
}

</mosaic_0001>

<bundles_post_ra>
// kernel: deform_block_pallas.1
= control target key start
LH: loop header
LB: loop body
LE: loop exit
PB: predicated region body
PF: predicated region fallthrough
CT: control target
= control target key end

     0   :  { %s2304_s19 = smov 17   ;;  %s2305_s24 = smov 16   ;;  %v2311_v4 = vmov 0.0   ;;  %v29_v5 = vlaneseq  ;;  %vm346_vm8 = vcmask 588800   ;;  %vm578_vm9 = vcmask 261120   ;;  %s3017_s0 = inlined_call_operand.vmem [shape: f32[8,512], index: 0, kind: input, shape index: {}]   ;;  %s3018_s1 = inlined_call_operand.vmem [shape: f32[12,512], index: 1, kind: input, shape index: {}]   ;;  %s3019_s2 = inlined_call_operand.vmem [shape: f32[32,72], index: 2, kind: input, shape index: {}]   ;;  %s3020_s3 = inlined_call_operand.vmem [shape: f32[9,3,32], index: 3, kind: input, shape index: {}]   ;;  %s3021_s4 = inlined_call_operand.vmem [shape: f32[3,512], index: 4, kind: output, shape index: {}]  }
   0x1   :  { %v2341_v0 = vld [vmem:[%s3017_s0 + $0x10] sm:$0xff]  ;;  %v2346_v1 = vld [vmem:[%s3017_s0] sm:$0xff]  ;;  %v2355_v2 = vld [vmem:[%s3017_s0 + $0x18] sm:$0xff]  ;;  %s2306_s25 = smov 15   ;;  %s2307_s26 = smov 1   ;;  %423 = vmatprep.mubr.f32.mxu0 %v2311_v4  ;;  %512 = vmatprep.mubr.f32.mxu1 %v2311_v4 }
   0x2   :  { %25 = vrot.lane.b32.xlu1 %v2341_v0, %s2304_s19  ;;  %21 = vrot.lane.b32.xlu0 %v2346_v1, %s2304_s19  ;;  %v2360_v3 = vld [vmem:[%s3017_s0 + $0x8] sm:$0xff]  ;;  %s2308_s27 = smov 127   ;;  %s2309_s28 = smov 113   ;;  %v39_v6 = vshrl.u32 %v29_v5, 7  ;;  %v2424_v9 = vand.u32 127, %v29_v5 }
   0x3   :  { %s2310_s29 = smov 112   ;;  %s2312_s30 = smov 111   ;;  %v36_v11 = vld [vmem:[%s3018_s1] ss:$8 sm:$0xf] }
   0x4   :  { %v2426_v10 = vsub.s32 1, %v39_v6  ;;  %v2078_v12 = vld [vmem:[%s3018_s1 + $0x1] ss:$8 sm:$0xf]  ;;  %vm31_vm0 = vcmp.lt.s32.totalorder %v2424_v9, 17  ;;  %v2435_v13 = vsub.s32 0, %v39_v6 }
   0x5   :  { %v2437_v15 = vsub.s32 2, %v39_v6  ;;  %v2439_v17 = vsub.s32 3, %v39_v6  ;;  %vm70_vm1 = vcmp.lt.s32.totalorder %v2424_v9, 16  ;;  %v2079_v52 = vld [vmem:[%s3018_s1 + $0x2] ss:$8 sm:$0xf] }
   0x6   :  { %27 = vrot.lane.b32.xlu1 %v2355_v2, %s2304_s19  ;;  %23 = vrot.lane.b32.xlu0 %v2360_v3, %s2304_s19  ;;  %v2443_v18 = vrot.slane %v36_v11, %v2426_v10  ;;  %v2446_v19 = vrot.slane %v2078_v12, %v2426_v10  ;;  %v2451_v21 = vrot.slane %v36_v11, %v2435_v13  ;;  %v2080_v53 = vld [vmem:[%s3018_s1 + $0x3] ss:$8 sm:$0xf]  ;;  %vm110_vm2 = vcmp.lt.s32.totalorder %v2424_v9, 15 }
   0x7   :  { %v2454_v22 = vrot.slane %v36_v11, %v2437_v15  ;;  %v2457_v25 = vrot.slane %v2078_v12, %v2435_v13  ;;  %v2464_v28 = vrot.slane %v2078_v12, %v2437_v15  ;;  %v2467_v29 = vrot.slane %v36_v11, %v2439_v17 }
   0x8   :  { %v2474_v33 = vrot.slane %v2078_v12, %v2439_v17  ;;  %v2498_v56 = vrot.slane %v2079_v52, %v2426_v10  ;;  %vm150_vm3 = vcmp.lt.s32.totalorder %v2424_v9, 1  ;;  %v2502_v57 = vrot.slane %v2080_v53, %v2426_v10 }
   0x9   :  { %v2507_v59 = vrot.slane %v2079_v52, %v2435_v13  ;;  %v2510_v60 = vrot.slane %v2079_v52, %v2437_v15  ;;  %v2513_v61 = vrot.slane %v2079_v52, %v2439_v17  ;;  %vm190_vm4 = vcmp.lt.s32.totalorder %v2424_v9, 127 }
   0xa   :  { %64 = vrot.lane.b32.xlu1 %v2360_v3, %s2305_s24  ;;  %62 = vrot.lane.b32.xlu0 %v2346_v1, %s2305_s24  ;;  %vm270_vm5 = vcmp.lt.s32.totalorder %v2424_v9, 112  ;;  %vm230_vm6 = vcmp.lt.s32.totalorder %v2424_v9, 113  ;;  %vm310_vm7 = vcmp.lt.s32.totalorder %v2424_v9, 111 }
   0xe   :  { %68 = vrot.lane.b32.xlu1 %v2355_v2, %s2305_s24  ;;  %66 = vrot.lane.b32.xlu0 %v2341_v0, %s2305_s24 }
  0x12   :  { %104 = vrot.lane.b32.xlu1 %v2360_v3, %s2306_s25  ;;  %102 = vrot.lane.b32.xlu0 %v2346_v1, %s2306_s25 }
  0x16   :  { %108 = vrot.lane.b32.xlu1 %v2355_v2, %s2306_s25  ;;  %106 = vrot.lane.b32.xlu0 %v2341_v0, %s2306_s25 }
  0x1a   :  { %144 = vrot.lane.b32.xlu1 %v2360_v3, %s2307_s26  ;;  %142 = vrot.lane.b32.xlu0 %v2346_v1, %s2307_s26 }
  0x1e   :  { %148 = vrot.lane.b32.xlu1 %v2355_v2, %s2307_s26  ;;  %146 = vrot.lane.b32.xlu0 %v2341_v0, %s2307_s26 }
  0x22   :  { %184 = vrot.lane.b32.xlu1 %v2360_v3, %s2308_s27  ;;  %182 = vrot.lane.b32.xlu0 %v2346_v1, %s2308_s27 }
  0x26   :  { %188 = vrot.lane.b32.xlu1 %v2355_v2, %s2308_s27  ;;  %186 = vrot.lane.b32.xlu0 %v2341_v0, %s2308_s27 }
  0x2a   :  { %224 = vrot.lane.b32.xlu1 %v2360_v3, %s2309_s28  ;;  %222 = vrot.lane.b32.xlu0 %v2346_v1, %s2309_s28 }
  0x2e   :  { %228 = vrot.lane.b32.xlu1 %v2355_v2, %s2309_s28  ;;  %226 = vrot.lane.b32.xlu0 %v2341_v0, %s2309_s28 }
  0x32   :  { %264 = vrot.lane.b32.xlu1 %v2360_v3, %s2310_s29  ;;  %262 = vrot.lane.b32.xlu0 %v2346_v1, %s2310_s29 }
  0x36   :  { %268 = vrot.lane.b32.xlu1 %v2355_v2, %s2310_s29  ;;  %266 = vrot.lane.b32.xlu0 %v2341_v0, %s2310_s29 }
  0x3a   :  { %304 = vrot.lane.b32.xlu1 %v2360_v3, %s2312_s30  ;;  %302 = vrot.lane.b32.xlu0 %v2346_v1, %s2312_s30 }
  0x3e   :  { %308 = vrot.lane.b32.xlu1 %v2355_v2, %s2312_s30  ;;  %306 = vrot.lane.b32.xlu0 %v2341_v0, %s2312_s30 }
  0x74   :  { %v26_v7 = vpop.permute.xlu1 %25  ;;  %v22_v8 = vpop.permute.xlu0 %21 }
  0x78   :  { %v28_v14 = vpop.permute.xlu1 %27  ;;  %v24_v16 = vpop.permute.xlu0 %23 }
  0x79   :  { %v34_v20 = vsel %vm31_vm0, %v22_v8, %v24_v16  ;;  %v35_v26 = vsel %vm31_vm0, %v28_v14, %v22_v8  ;;  %v33_v30 = vsel %vm31_vm0, %v24_v16, %v26_v7  ;;  %v32_v34 = vsel %vm31_vm0, %v26_v7, %v28_v14 }
  0x7a   :  { %v59_v31 = vmul.f32 %v2443_v18, %v34_v20  ;;  %v58_v35 = vmul.f32 %v2451_v21, %v35_v26  ;;  %v60_v39 = vmul.f32 %v2454_v22, %v33_v30  ;;  %v61_v45 = vmul.f32 %v2467_v29, %v32_v34 }
  0x7b   :  { %v2520_v7 = vrot.slane %v2080_v53, %v2435_v13  ;;  %v2523_v8 = vrot.slane %v2080_v53, %v2437_v15  ;;  %v2530_v16 = vrot.slane %v2080_v53, %v2439_v17 }
  0x7c   :  { %v65_v23 = vpop.permute.xlu1 %64  ;;  %v63_v24 = vpop.permute.xlu0 %62 }
  0x7d   :  { %v73_v27 = vsel %vm70_vm1, %v63_v24, %v65_v23 }
  0x7e   :  { %v99_v32 = vmul.f32 %v2446_v19, %v73_v27 }
  0x80   :  { %v69_v36 = vpop.permute.xlu1 %68  ;;  %v67_v37 = vpop.permute.xlu0 %66  ;;  %v2119_v38 = vpack.c.bf16 %v99_v32, %v59_v31 }
  0x81   :  { %v74_v40 = vsel %vm70_vm1, %v69_v36, %v63_v24  ;;  %v71_v41 = vsel %vm70_vm1, %v67_v37, %v69_v36  ;;  %v72_v42 = vsel %vm70_vm1, %v65_v23, %v67_v37 }
  0x82   :  { %v98_v43 = vmul.f32 %v2457_v25, %v74_v40  ;;  %v100_v44 = vmul.f32 %v2464_v28, %v72_v42  ;;  %2120 = vmatprep.subr.bf16.mxu0 %v2119_v38  ;;  %v101_v46 = vmul.f32 %v2474_v33, %v71_v41 }
  0x84   :  { %v105_v47 = vpop.permute.xlu1 %104  ;;  %v103_v48 = vpop.permute.xlu0 %102  ;;  %v2121_v49 = vpack.c.bf16 %v98_v43, %v58_v35  ;;  %v2135_v50 = vpack.c.bf16 %v101_v46, %v61_v45  ;;  %v2137_v51 = vpack.c.bf16 %v100_v44, %v60_v39  ;;  %v2081_v39 = vld [vmem:[%s3018_s1 + $0x5] ss:$8 sm:$0xf] }
  0x85   :  { %v113_v58 = vsel %vm110_vm2, %v103_v48, %v105_v47  ;;  %v2551_v45 = vrot.slane %v2081_v39, %v2435_v13  ;;  %v2554_v46 = vrot.slane %v2081_v39, %v2439_v17 }
  0x86   :  { %2122 = vmatpush1.bf16.msra.mxu0 %v2121_v49  ;;  %2136 = vmatprep.subr.bf16.mxu1 %v2135_v50  ;;  %v139_v11 = vmul.f32 %v2498_v56, %v113_v58  ;;  %v2562_v49 = vrot.slane %v2081_v39, %v2437_v15 }
  0x87   :  { %2138 = vmatpush1.bf16.msra.mxu1 %v2137_v51 }
  0x88   :  { %v109_v54 = vpop.permute.xlu1 %108  ;;  %v107_v55 = vpop.permute.xlu0 %106 }
  0x89   :  { %v114_v5 = vsel %vm110_vm2, %v109_v54, %v103_v48  ;;  %v112_v12 = vsel %vm110_vm2, %v105_v47, %v107_v55  ;;  %v111_v20 = vsel %vm110_vm2, %v107_v55, %v109_v54  ;;  %v2559_v48 = vrot.slane %v2081_v39, %v2426_v10 }
  0x8a   :  { %v138_v23 = vmul.f32 %v2507_v59, %v114_v5  ;;  %v140_v30 = vmul.f32 %v2510_v60, %v112_v12  ;;  %v141_v35 = vmul.f32 %v2513_v61, %v111_v20 }
  0x8c   :  { %v145_v62 = vpop.permute.xlu1 %144  ;;  %v143_v63 = vpop.permute.xlu0 %142 }
  0x8d   :  { %v153_v6 = vsel %vm150_vm3, %v143_v63, %v145_v62 }
  0x8e   :  { %v179_v14 = vmul.f32 %v2502_v57, %v153_v6 }
  0x90   :  { %v149_v24 = vpop.permute.xlu1 %148  ;;  %v147_v26 = vpop.permute.xlu0 %146  ;;  %v2123_v27 = vpack.c.bf16 %v179_v14, %v139_v11 }
  0x91   :  { %v154_v31 = vsel %vm150_vm3, %v149_v24, %v143_v63  ;;  %v151_v32 = vsel %vm150_vm3, %v147_v26, %v149_v24  ;;  %v152_v34 = vsel %vm150_vm3, %v145_v62, %v147_v26  ;;  %v2083_v26 = vld [vmem:[%s3018_s1 + $0x7] ss:$8 sm:$0xf] }
  0x92   :  { %v178_v36 = vmul.f32 %v2520_v7, %v154_v31  ;;  %v180_v37 = vmul.f32 %v2523_v8, %v152_v34  ;;  %v181_v38 = vmul.f32 %v2530_v16, %v151_v32  ;;  %2124 = vmatprep.subr.bf16.mxu0 %v2123_v27  ;;  %v2600_v34 = vrot.slane %v2083_v26, %v2435_v13 }
  0x94   :  { %v185_v40 = vpop.permute.xlu1 %184  ;;  %v183_v41 = vpop.permute.xlu0 %182  ;;  %v2125_v42 = vpack.c.bf16 %v178_v36, %v138_v23  ;;  %v2139_v43 = vpack.c.bf16 %v181_v38, %v141_v35  ;;  %v2141_v44 = vpack.c.bf16 %v180_v37, %v140_v30  ;;  %3036 = vst [vmem:[#allocation5_spill] sm:$0xff] %v2600_v34  ;;  %v2605_v36 = vrot.slane %v2083_v26, %v2439_v17 }
  0x95   :  { %v193_v47 = vsel %vm190_vm4, %v183_v41, %v185_v40  ;;  %v2608_v37 = vrot.slane %v2083_v26, %v2426_v10  ;;  %v2611_v38 = vrot.slane %v2083_v26, %v2437_v15 }
  0x96   :  { %2126 = vmatpush1.bf16.msra.mxu0 %v2125_v42  ;;  %2140 = vmatprep.subr.bf16.mxu1 %v2139_v43  ;;  %v218_v52 = vmul.f32 %v2551_v45, %v193_v47  ;;  %3037 = vst [vmem:[#allocation6_spill] sm:$0xff] %v2605_v36 }
  0x97   :  { %2142 = vmatpush1.bf16.msra.mxu1 %v2141_v44  ;;  %3038 = vst [vmem:[#allocation7_spill] sm:$0xff] %v2608_v37  ;;  %3039 = vst [vmem:[#allocation8_spill] sm:$0xff] %v2611_v38 }
  0x98   :  { %v189_v50 = vpop.permute.xlu1 %188  ;;  %v187_v51 = vpop.permute.xlu0 %186  ;;  %v2129_v20 = vpack.c.bf16 %v218_v52, %v2346_v1 }
  0x99   :  { %v194_v53 = vsel %vm190_vm4, %v189_v50, %v183_v41  ;;  %v191_v54 = vsel %vm190_vm4, %v187_v51, %v189_v50  ;;  %v192_v55 = vsel %vm190_vm4, %v185_v40, %v187_v51 }
  0x9a   :  { %v221_v58 = vmul.f32 %v2554_v46, %v194_v53  ;;  %v219_v62 = vmul.f32 %v2559_v48, %v192_v55  ;;  %v220_v63 = vmul.f32 %v2562_v49, %v191_v54 }
  0x9c   :  { %v225_v5 = vpop.permute.xlu1 %224  ;;  %v223_v6 = vpop.permute.xlu0 %222  ;;  %v2127_v11 = vpack.c.bf16 %v219_v62, %v2360_v3  ;;  %v2143_v12 = vpack.c.bf16 %v221_v58, %v2355_v2  ;;  %v2145_v14 = vpack.c.bf16 %v220_v63, %v2341_v0  ;;  %v2082_v3 = vld [vmem:[%s3018_s1 + $0x6] ss:$8 sm:$0xf] }
  0x9d   :  { %v2587_v0 = vrot.slane %v2082_v3, %v2439_v17  ;;  %v2590_v1 = vrot.slane %v2082_v3, %v2426_v10  ;;  %v2595_v31 = vrot.slane %v2082_v3, %v2437_v15  ;;  %v2614_v39 = vrot.slane %v2082_v3, %v2435_v13 }
  0x9e   :  { %2128 = vmatprep.subr.bf16.mxu0 %v2127_v11  ;;  %2144 = vmatprep.subr.bf16.mxu1 %v2143_v12  ;;  %v233_v41 = vsel %vm230_vm6, %v223_v6, %v225_v5 }
  0x9f   :  { %2130 = vmatpush1.bf16.msra.mxu0 %v2129_v20  ;;  %2146 = vmatpush1.bf16.msra.mxu1 %v2145_v14  ;;  %3033 = vst [vmem:[#allocation2_spill] sm:$0xff] %v2587_v0  ;;  %3034 = vst [vmem:[#allocation3_spill] sm:$0xff] %v2590_v1  ;;  %v258_v63 = vmul.f32 %v2614_v39, %v233_v41 }
  0xa0   :  { %v229_v23 = vpop.permute.xlu1 %228  ;;  %v227_v24 = vpop.permute.xlu0 %226  ;;  %3035 = vst [vmem:[#allocation4_spill] sm:$0xff] %v2595_v31 }
  0xa1   :  { %v234_v30 = vsel %vm230_vm6, %v229_v23, %v223_v6  ;;  %v232_v32 = vsel %vm230_vm6, %v225_v5, %v227_v24  ;;  %v231_v40 = vsel %vm230_vm6, %v227_v24, %v229_v23  ;;  %v2084_v6 = vld [vmem:[%s3018_s1 + $0x20] ss:$8 sm:$0xf] }
  0xa2   :  { %v261_v42 = vmul.f32 %v2587_v0, %v234_v30  ;;  %v259_v43 = vmul.f32 %v2590_v1, %v232_v32  ;;  %v260_v54 = vmul.f32 %v2595_v31, %v231_v40  ;;  %v2639_v24 = vrot.slane %v2084_v6, %v2439_v17 }
  0xa3   :  { %v2642_v26 = vrot.slane %v2084_v6, %v2426_v10  ;;  %v2645_v3 = vrot.slane %v2084_v6, %v2437_v15 }
  0xa4   :  { %v265_v2 = vpop.permute.xlu1 %264  ;;  %v263_v27 = vpop.permute.xlu0 %262  ;;  %3040 = vst [vmem:[#allocation9_spill] sm:$0xff] %v2639_v24 }
  0xa5   :  { %v273_v35 = vsel %vm270_vm5, %v263_v27, %v265_v2  ;;  %3041 = vst [vmem:[#allocation10_spill] sm:$0xff] %v2642_v26  ;;  %3042 = vst [vmem:[#allocation11_spill] sm:$0xff] %v2645_v3 }
  0xa6   :  { %v298_v50 = vmul.f32 %v2600_v34, %v273_v35 }
  0xa8   :  { %v269_v44 = vpop.permute.xlu1 %268  ;;  %v267_v47 = vpop.permute.xlu0 %266  ;;  %v2133_v23 = vpack.c.bf16 %v298_v50, %v258_v63 }
  0xa9   :  { %v274_v51 = vsel %vm270_vm5, %v269_v44, %v263_v27  ;;  %v271_v52 = vsel %vm270_vm5, %v267_v47, %v269_v44  ;;  %v272_v53 = vsel %vm270_vm5, %v265_v2, %v267_v47  ;;  %v2648_v2 = vrot.slane %v2084_v6, %v2435_v13  ;;  %v344_v44 = vld [vmem:[%s3019_s2 + $0x10] sm:$0xff]  ;;  %v345_v47 = vld [vmem:[%s3019_s2 + $0x18] sm:$0xff] }
  0xaa   :  { %v301_v55 = vmul.f32 %v2605_v36, %v274_v51  ;;  %v299_v58 = vmul.f32 %v2608_v37, %v272_v53  ;;  %v300_v62 = vmul.f32 %v2611_v38, %v271_v52  ;;  %v553_v36 = vld [vmem:[%s3017_s0] sm:$0x7] }
  0xab   :  { %3043 = vst [vmem:[#allocation12_spill] sm:$0xff] %v2648_v2 }
  0xac   :  { %v305_v5 = vpop.permute.xlu1 %304  ;;  %v303_v11 = vpop.permute.xlu0 %302  ;;  %v2131_v12 = vpack.c.bf16 %v299_v58, %v259_v43  ;;  %v2147_v14 = vpack.c.bf16 %v301_v55, %v261_v42  ;;  %v2149_v20 = vpack.c.bf16 %v300_v62, %v260_v54  ;;  %v342_v42 = vld [vmem:[%s3019_s2] sm:$0xff]  ;;  %v343_v43 = vld [vmem:[%s3019_s2 + $0x8] sm:$0xff] }
  0xad   :  { %v313_v27 = vsel %vm310_vm7, %v303_v11, %v305_v5 }
  0xae   :  { %2132 = vmatprep.subr.bf16.mxu0 %v2131_v12  ;;  %2148 = vmatprep.subr.bf16.mxu1 %v2147_v14  ;;  %v338_v41 = vmul.f32 %v2648_v2, %v313_v27 }
  0xaf   :  { %2134 = vmatpush1.bf16.msra.mxu0 %v2133_v23  ;;  %2150 = vmatpush1.bf16.msra.mxu1 %v2149_v20 }
  0xb0   :  { %v309_v30 = vpop.permute.xlu1 %308  ;;  %v307_v32 = vpop.permute.xlu0 %306 }
  0xb1   :  { %v314_v17 = vsel %vm310_vm7, %v309_v30, %v303_v11  ;;  %v311_v10 = vsel %vm310_vm7, %v307_v32, %v309_v30  ;;  %v312_v15 = vsel %vm310_vm7, %v305_v5, %v307_v32 }
  0xb2   :  { %v341_v35 = vmul.f32 %v2639_v24, %v314_v17  ;;  %v339_v13 = vmul.f32 %v2642_v26, %v312_v15  ;;  %v340_v40 = vmul.f32 %v2645_v3, %v311_v10 }
  0xb4   :  { %375 = vmatprep.subr.mxu0 %v339_v13  ;;  %464 = vmatprep.subr.mxu1 %v341_v35 }
  0xb5   :  { %376 = vmatpush1.msra.mxu0 %v338_v41  ;;  %465 = vmatpush1.msra.mxu1 %v340_v40 }
  0xb6   :  { %2085 = vmatmul.mubr.msk.f32.vlgmr.msra.gmra.mrb[0].mxu0 %vm346_vm8, %v342_v42  ;;  %2089 = vmatmul.mubr.msk.f32.vlgmr.msra.gmra.mrb[0].mxu1 %vm346_vm8, %v342_v42 }
  0xb7   :  { %429 = vmatprep.mubr.f32.mxu0 %v2311_v4  ;;  %518 = vmatprep.mubr.f32.mxu1 %v2311_v4 }
  0xba   :  { %2086 = vmatmul.mubr.msk.f32.gmra.mrb[2].mxu0 %vm346_vm8, %v343_v43  ;;  %2090 = vmatmul.mubr.msk.f32.gmra.mrb[2].mxu1 %vm346_vm8, %v343_v43 }
  0xbb   :  { %435 = vmatprep.mubr.f32.mxu0 %v2311_v4  ;;  %524 = vmatprep.mubr.f32.mxu1 %v2311_v4 }
  0xbe   :  { %2087 = vmatmul.mubr.msk.f32.gmra.mrb[4].mxu0 %vm346_vm8, %v344_v44  ;;  %2091 = vmatmul.mubr.msk.f32.gmra.mrb[4].mxu1 %vm346_vm8, %v344_v44 }
  0xbf   :  { %441 = vmatprep.mubr.f32.mxu0 %v2311_v4  ;;  %530 = vmatprep.mubr.f32.mxu1 %v2311_v4 }
  0xc2   :  { %2088 = vmatmul.mubr.msk.f32.gmra.mrb[6].mxu0 %vm346_vm8, %v345_v47  ;;  %2092 = vmatmul.mubr.msk.f32.gmra.mrb[6].mxu1 %vm346_vm8, %v345_v47 }
  0xc3   :  { %646 = vmatprep.mubr.f32.mxu0 %v2311_v4  ;;  %717 = vmatprep.mubr.f32.mxu1 %v2311_v4 }
 0x189   :  { %v425_v50 = vpop.f32.mrb[0].mxu0  ;;  %v514_v51 = vpop.f32.mrb[0].mxu1 }
 0x18a   :  { %v427_v52 = vpop.f32.mrb[1].mxu0  ;;  %v516_v53 = vpop.f32.mrb[1].mxu1  ;;  %v539_v54 = vmax.f32 %v514_v51, 0.0  ;;  %v537_v63 = vmax.f32 %v425_v50, 0.0 }
 0x18b   :  { %v540_v55 = vmax.f32 %v516_v53, 0.0  ;;  %v538_v14 = vmax.f32 %v427_v52, 0.0 }
 0x18d   :  { %v431_v58 = vpop.f32.mrb[2].mxu0  ;;  %v520_v62 = vpop.f32.mrb[2].mxu1 }
 0x18e   :  { %v541_v5 = vmax.f32 %v431_v58, 0.0  ;;  %v543_v6 = vmax.f32 %v520_v62, 0.0  ;;  %v433_v11 = vpop.f32.mrb[3].mxu0  ;;  %v522_v12 = vpop.f32.mrb[3].mxu1 }
 0x18f   :  { %v542_v20 = vmax.f32 %v433_v11, 0.0  ;;  %v544_v23 = vmax.f32 %v522_v12, 0.0  ;;  %v2095_v11 = vld [vmem:[%s3020_s3 + $0x4] sm:$0x7]  ;;  %v2098_v12 = vld [vmem:[%s3020_s3 + $0x8] sm:$0x7] }
 0x190   :  { %v2690_v27 = vpack.c.bf16 %v541_v5, %v537_v63  ;;  %v2692_v30 = vpack.c.bf16 %v543_v6, %v539_v54  ;;  %v577_v6 = vld [vmem:[%s3020_s3] sm:$0x7] }
 0x191   :  { %v2694_v32 = vpack.c.bf16 %v542_v20, %v538_v14  ;;  %v2696_v17 = vpack.c.bf16 %v544_v23, %v540_v55  ;;  %v437_v10 = vpop.f32.mrb[4].mxu0  ;;  %v526_v15 = vpop.f32.mrb[4].mxu1  ;;  %v2101_v14 = vld [vmem:[%s3020_s3 + $0xc] sm:$0x7]  ;;  %v2104_v20 = vld [vmem:[%s3020_s3 + $0x10] sm:$0x7] }
 0x192   :  { %v439_v35 = vpop.f32.mrb[5].mxu0  ;;  %v528_v13 = vpop.f32.mrb[5].mxu1  ;;  %v547_v40 = vmax.f32 %v526_v15, 0.0  ;;  %v545_v44 = vmax.f32 %v437_v10, 0.0  ;;  %v2107_v23 = vld [vmem:[%s3020_s3 + $0x14] sm:$0x7] }
 0x193   :  { %2152 = vmatprep.subr.bf16.mxu0 %v2694_v32  ;;  %2160 = vmatprep.subr.bf16.mxu1 %v2696_v17  ;;  %v548_v41 = vmax.f32 %v528_v13, 0.0  ;;  %v546_v53 = vmax.f32 %v439_v35, 0.0  ;;  %v2110_v10 = vld [vmem:[%s3020_s3 + $0x18] sm:$0x7]  ;;  %v2113_v15 = vld [vmem:[%s3020_s3 + $0x1c] sm:$0x7] }
 0x194   :  { %2154 = vmatpush1.bf16.msra.mxu0 %v2690_v27  ;;  %2162 = vmatpush1.bf16.msra.mxu1 %v2692_v30 }
 0x195   :  { %v443_v42 = vpop.f32.mrb[6].mxu0  ;;  %v532_v43 = vpop.f32.mrb[6].mxu1 }
 0x196   :  { %v549_v47 = vmax.f32 %v443_v42, 0.0  ;;  %v551_v50 = vmax.f32 %v532_v43, 0.0  ;;  %v445_v51 = vpop.f32.mrb[7].mxu0  ;;  %v534_v52 = vpop.f32.mrb[7].mxu1 }
 0x197   :  { %v550_v54 = vmax.f32 %v445_v51, 0.0  ;;  %v552_v55 = vmax.f32 %v534_v52, 0.0 }
 0x198   :  { %v2702_v58 = vpack.c.bf16 %v549_v47, %v545_v44  ;;  %v2704_v62 = vpack.c.bf16 %v551_v50, %v547_v40 }
 0x199   :  { %v2706_v63 = vpack.c.bf16 %v550_v54, %v546_v53  ;;  %v2708_v5 = vpack.c.bf16 %v552_v55, %v548_v41 }
 0x19b   :  { %2156 = vmatprep.subr.bf16.mxu0 %v2706_v63  ;;  %2164 = vmatprep.subr.bf16.mxu1 %v2708_v5 }
 0x19c   :  { %2158 = vmatpush1.bf16.msra.mxu0 %v2702_v58  ;;  %2166 = vmatpush1.bf16.msra.mxu1 %v2704_v62 }
 0x19d   :  { %2168 = vmatprep.subr.bf16.mxu0 %v2694_v32  ;;  %2176 = vmatprep.subr.bf16.mxu1 %v2696_v17 }
 0x19f   :  { %2093 = vmatmul.mubr.msk.f32.vlgmr.msra.gmra.mrb[8].mxu0 %vm578_vm9, %v577_v6  ;;  %2094 = vmatmul.mubr.msk.f32.vlgmr.msra.gmra.mrb[8].mxu1 %vm578_vm9, %v577_v6 }
 0x1a0   :  { %2170 = vmatpush1.bf16.msra.mxu0 %v2690_v27  ;;  %2178 = vmatpush1.bf16.msra.mxu1 %v2692_v30 }
 0x1a1   :  { %2172 = vmatprep.subr.bf16.mxu0 %v2706_v63  ;;  %2180 = vmatprep.subr.bf16.mxu1 %v2708_v5 }
 0x1a2   :  { %813 = vmatprep.mubr.f32.mxu0 %v2311_v4  ;;  %884 = vmatprep.mubr.f32.mxu1 %v2311_v4 }
 0x1a4   :  { %2174 = vmatpush1.bf16.msra.mxu0 %v2702_v58  ;;  %2182 = vmatpush1.bf16.msra.mxu1 %v2704_v62 }
 0x1a5   :  { %2184 = vmatprep.subr.bf16.mxu0 %v2694_v32  ;;  %2192 = vmatprep.subr.bf16.mxu1 %v2696_v17 }
 0x1a7   :  { %2096 = vmatmul.mubr.msk.f32.vlgmr.msra.gmra.mrb[10].mxu0 %vm578_vm9, %v2095_v11  ;;  %2097 = vmatmul.mubr.msk.f32.vlgmr.msra.gmra.mrb[10].mxu1 %vm578_vm9, %v2095_v11 }
 0x1a8   :  { %2186 = vmatpush1.bf16.msra.mxu0 %v2690_v27  ;;  %2194 = vmatpush1.bf16.msra.mxu1 %v2692_v30 }
 0x1a9   :  { %2188 = vmatprep.subr.bf16.mxu0 %v2706_v63  ;;  %2196 = vmatprep.subr.bf16.mxu1 %v2708_v5 }
 0x1aa   :  { %980 = vmatprep.mubr.f32.mxu0 %v2311_v4  ;;  %1051 = vmatprep.mubr.f32.mxu1 %v2311_v4 }
 0x1ac   :  { %2190 = vmatpush1.bf16.msra.mxu0 %v2702_v58  ;;  %2198 = vmatpush1.bf16.msra.mxu1 %v2704_v62 }
 0x1ad   :  { %2200 = vmatprep.subr.bf16.mxu0 %v2694_v32  ;;  %2208 = vmatprep.subr.bf16.mxu1 %v2696_v17 }
 0x1af   :  { %2099 = vmatmul.mubr.msk.f32.vlgmr.msra.gmra.mrb[12].mxu0 %vm578_vm9, %v2098_v12  ;;  %2100 = vmatmul.mubr.msk.f32.vlgmr.msra.gmra.mrb[12].mxu1 %vm578_vm9, %v2098_v12 }
 0x1b0   :  { %2202 = vmatpush1.bf16.msra.mxu0 %v2690_v27  ;;  %2210 = vmatpush1.bf16.msra.mxu1 %v2692_v30 }
 0x1b1   :  { %2204 = vmatprep.subr.bf16.mxu0 %v2706_v63  ;;  %2212 = vmatprep.subr.bf16.mxu1 %v2708_v5 }
 0x1b2   :  { %1147 = vmatprep.mubr.f32.mxu0 %v2311_v4  ;;  %1218 = vmatprep.mubr.f32.mxu1 %v2311_v4 }
 0x1b4   :  { %2206 = vmatpush1.bf16.msra.mxu0 %v2702_v58  ;;  %2214 = vmatpush1.bf16.msra.mxu1 %v2704_v62 }
 0x1b5   :  { %2216 = vmatprep.subr.bf16.mxu0 %v2694_v32  ;;  %2224 = vmatprep.subr.bf16.mxu1 %v2696_v17 }
 0x1b7   :  { %2102 = vmatmul.mubr.msk.f32.vlgmr.msra.gmra.mrb[14].mxu0 %vm578_vm9, %v2101_v14  ;;  %2103 = vmatmul.mubr.msk.f32.vlgmr.msra.gmra.mrb[14].mxu1 %vm578_vm9, %v2101_v14 }
 0x1b8   :  { %2218 = vmatpush1.bf16.msra.mxu0 %v2690_v27  ;;  %2226 = vmatpush1.bf16.msra.mxu1 %v2692_v30 }
 0x1b9   :  { %2220 = vmatprep.subr.bf16.mxu0 %v2706_v63  ;;  %2228 = vmatprep.subr.bf16.mxu1 %v2708_v5 }
 0x1ba   :  { %1314 = vmatprep.mubr.f32.mxu0 %v2311_v4  ;;  %1385 = vmatprep.mubr.f32.mxu1 %v2311_v4 }
 0x1bc   :  { %2222 = vmatpush1.bf16.msra.mxu0 %v2702_v58  ;;  %2230 = vmatpush1.bf16.msra.mxu1 %v2704_v62 }
 0x1bd   :  { %2232 = vmatprep.subr.bf16.mxu0 %v2694_v32  ;;  %2240 = vmatprep.subr.bf16.mxu1 %v2696_v17 }
 0x1bf   :  { %2105 = vmatmul.mubr.msk.f32.vlgmr.msra.gmra.mrb[16].mxu0 %vm578_vm9, %v2104_v20  ;;  %2106 = vmatmul.mubr.msk.f32.vlgmr.msra.gmra.mrb[16].mxu1 %vm578_vm9, %v2104_v20 }
 0x1c0   :  { %2234 = vmatpush1.bf16.msra.mxu0 %v2690_v27  ;;  %2242 = vmatpush1.bf16.msra.mxu1 %v2692_v30 }
 0x1c1   :  { %2236 = vmatprep.subr.bf16.mxu0 %v2706_v63  ;;  %2244 = vmatprep.subr.bf16.mxu1 %v2708_v5 }
 0x1c2   :  { %1465 = vmatprep.mubr.f32.mxu0 %v2311_v4  ;;  %1536 = vmatprep.mubr.f32.mxu1 %v2311_v4 }
 0x1c4   :  { %2238 = vmatpush1.bf16.msra.mxu0 %v2702_v58  ;;  %2246 = vmatpush1.bf16.msra.mxu1 %v2704_v62 }
 0x1c5   :  { %2248 = vmatprep.subr.bf16.mxu0 %v2694_v32  ;;  %2256 = vmatprep.subr.bf16.mxu1 %v2696_v17 }
 0x1c7   :  { %2108 = vmatmul.mubr.msk.f32.vlgmr.msra.gmra.mrb[18].mxu0 %vm578_vm9, %v2107_v23  ;;  %2109 = vmatmul.mubr.msk.f32.vlgmr.msra.gmra.mrb[18].mxu1 %vm578_vm9, %v2107_v23 }
 0x1c8   :  { %2250 = vmatpush1.bf16.msra.mxu0 %v2690_v27  ;;  %2258 = vmatpush1.bf16.msra.mxu1 %v2692_v30 }
 0x1c9   :  { %2252 = vmatprep.subr.bf16.mxu0 %v2706_v63  ;;  %2260 = vmatprep.subr.bf16.mxu1 %v2708_v5 }
 0x1ca   :  { %1632 = vmatprep.mubr.f32.mxu0 %v2311_v4  ;;  %1703 = vmatprep.mubr.f32.mxu1 %v2311_v4 }
 0x1cc   :  { %2254 = vmatpush1.bf16.msra.mxu0 %v2702_v58  ;;  %2262 = vmatpush1.bf16.msra.mxu1 %v2704_v62 }
 0x1cd   :  { %2264 = vmatprep.subr.bf16.mxu0 %v2694_v32  ;;  %2272 = vmatprep.subr.bf16.mxu1 %v2696_v17 }
 0x1cf   :  { %2111 = vmatmul.mubr.msk.f32.vlgmr.msra.gmra.mrb[20].mxu0 %vm578_vm9, %v2110_v10  ;;  %2112 = vmatmul.mubr.msk.f32.vlgmr.msra.gmra.mrb[20].mxu1 %vm578_vm9, %v2110_v10 }
 0x1d0   :  { %2266 = vmatpush1.bf16.msra.mxu0 %v2690_v27  ;;  %2274 = vmatpush1.bf16.msra.mxu1 %v2692_v30 }
 0x1d1   :  { %2268 = vmatprep.subr.bf16.mxu0 %v2706_v63  ;;  %2276 = vmatprep.subr.bf16.mxu1 %v2708_v5 }
 0x1d2   :  { %1799 = vmatprep.mubr.f32.mxu0 %v2311_v4  ;;  %1870 = vmatprep.mubr.f32.mxu1 %v2311_v4 }
 0x1d4   :  { %2270 = vmatpush1.bf16.msra.mxu0 %v2702_v58  ;;  %2278 = vmatpush1.bf16.msra.mxu1 %v2704_v62 }
 0x1d5   :  { %2280 = vmatprep.subr.bf16.mxu0 %v2694_v32  ;;  %2288 = vmatprep.subr.bf16.mxu1 %v2696_v17  ;;  %v2116_v32 = vld [vmem:[%s3020_s3 + $0x20] sm:$0x7] }
 0x1d7   :  { %2114 = vmatmul.mubr.msk.f32.vlgmr.msra.gmra.mrb[22].mxu0 %vm578_vm9, %v2113_v15  ;;  %2115 = vmatmul.mubr.msk.f32.vlgmr.msra.gmra.mrb[22].mxu1 %vm578_vm9, %v2113_v15 }
 0x1d8   :  { %2282 = vmatpush1.bf16.msra.mxu0 %v2690_v27  ;;  %2290 = vmatpush1.bf16.msra.mxu1 %v2692_v30 }
 0x1d9   :  { %2284 = vmatprep.subr.bf16.mxu0 %v2706_v63  ;;  %2292 = vmatprep.subr.bf16.mxu1 %v2708_v5 }
 0x1da   :  { %1966 = vmatprep.mubr.f32.mxu0 %v2311_v4  ;;  %2037 = vmatprep.mubr.f32.mxu1 %v2311_v4 }
 0x1dc   :  { %2286 = vmatpush1.bf16.msra.mxu0 %v2702_v58  ;;  %2294 = vmatpush1.bf16.msra.mxu1 %v2704_v62 }
 0x1df   :  { %2117 = vmatmul.mubr.msk.f32.vlgmr.msra.gmra.mrb[24].mxu0 %vm578_vm9, %v2116_v32  ;;  %2118 = vmatmul.mubr.msk.f32.vlgmr.msra.gmra.mrb[24].mxu1 %vm578_vm9, %v2116_v32 }
 0x272   :  { %v648_v27 = vpop.f32.mrb[8].mxu0  ;;  %v719_v30 = vpop.f32.mrb[8].mxu1 }
 0x273   :  { %724 = vrot.lane.b32.xlu0 %v648_v27, %s2304_s19  ;;  %v650_v17 = vpop.f32.mrb[9].mxu0  ;;  %v721_v35 = vpop.f32.mrb[9].mxu1 }
 0x274   :  { %726 = vrot.lane.b32.xlu1 %v650_v17, %s2304_s19 }
 0x277   :  { %728 = vrot.lane.b32.xlu0 %v719_v30, %s2304_s19 }
 0x278   :  { %730 = vrot.lane.b32.xlu1 %v721_v35, %s2304_s19 }
 0x27a   :  { %v815_v4 = vpop.f32.mrb[10].mxu0  ;;  %v886_v13 = vpop.f32.mrb[10].mxu1 }
 0x27b   :  { %v817_v40 = vpop.f32.mrb[11].mxu0  ;;  %891 = vrot.lane.b32.xlu0 %v815_v4, %s2305_s24  ;;  %v888_v41 = vpop.f32.mrb[11].mxu1 }
 0x27c   :  { %893 = vrot.lane.b32.xlu1 %v817_v40, %s2305_s24 }
 0x27f   :  { %895 = vrot.lane.b32.xlu0 %v886_v13, %s2305_s24 }
 0x280   :  { %897 = vrot.lane.b32.xlu1 %v888_v41, %s2305_s24 }
 0x282   :  { %v982_v42 = vpop.f32.mrb[12].mxu0  ;;  %v1053_v43 = vpop.f32.mrb[12].mxu1 }
 0x283   :  { %v984_v44 = vpop.f32.mrb[13].mxu0  ;;  %1058 = vrot.lane.b32.xlu0 %v982_v42, %s2306_s25  ;;  %v1055_v47 = vpop.f32.mrb[13].mxu1 }
 0x284   :  { %1060 = vrot.lane.b32.xlu1 %v984_v44, %s2306_s25 }
 0x287   :  { %1062 = vrot.lane.b32.xlu0 %v1053_v43, %s2306_s25 }
 0x288   :  { %1064 = vrot.lane.b32.xlu1 %v1055_v47, %s2306_s25 }
 0x28a   :  { %v1149_v50 = vpop.f32.mrb[14].mxu0  ;;  %v1220_v51 = vpop.f32.mrb[14].mxu1 }
 0x28b   :  { %v1151_v52 = vpop.f32.mrb[15].mxu0  ;;  %1225 = vrot.lane.b32.xlu0 %v1149_v50, %s2307_s26  ;;  %v1222_v53 = vpop.f32.mrb[15].mxu1 }
 0x28c   :  { %1227 = vrot.lane.b32.xlu1 %v1151_v52, %s2307_s26 }
 0x28f   :  { %1229 = vrot.lane.b32.xlu0 %v1220_v51, %s2307_s26 }
 0x290   :  { %1231 = vrot.lane.b32.xlu1 %v1222_v53, %s2307_s26 }
 0x292   :  { %v2855_v54 = vpop.f32.mrb[16].mxu0  ;;  %v2857_v55 = vpop.f32.mrb[16].mxu1 }
 0x293   :  { %v2859_v58 = vpop.f32.mrb[17].mxu0  ;;  %v2861_v62 = vpop.f32.mrb[17].mxu1 }
 0x29a   :  { %v1467_v63 = vpop.f32.mrb[18].mxu0  ;;  %v1538_v5 = vpop.f32.mrb[18].mxu1 }
 0x29b   :  { %v1469_v6 = vpop.f32.mrb[19].mxu0  ;;  %1543 = vrot.lane.b32.xlu0 %v1467_v63, %s2308_s27  ;;  %v1540_v11 = vpop.f32.mrb[19].mxu1 }
 0x29c   :  { %1545 = vrot.lane.b32.xlu1 %v1469_v6, %s2308_s27 }
 0x29f   :  { %1547 = vrot.lane.b32.xlu0 %v1538_v5, %s2308_s27 }
 0x2a0   :  { %1549 = vrot.lane.b32.xlu1 %v1540_v11, %s2308_s27 }
 0x2a2   :  { %v1634_v12 = vpop.f32.mrb[20].mxu0  ;;  %v1705_v14 = vpop.f32.mrb[20].mxu1 }
 0x2a3   :  { %v1636_v20 = vpop.f32.mrb[21].mxu0  ;;  %1710 = vrot.lane.b32.xlu0 %v1634_v12, %s2309_s28  ;;  %v1707_v23 = vpop.f32.mrb[21].mxu1  ;;  %v558_v12 = vld [vmem:[%s3018_s1 + $0x28] sm:$0xe] }
 0x2a4   :  { %1712 = vrot.lane.b32.xlu1 %v1636_v20, %s2309_s28  ;;  %v559_v20 = vld [vmem:[%s3018_s1 + $0x30] sm:$0xe] }
 0x2a7   :  { %1714 = vrot.lane.b32.xlu0 %v1705_v14, %s2309_s28 }
 0x2a8   :  { %1716 = vrot.lane.b32.xlu1 %v1707_v23, %s2309_s28  ;;  %v566_v23 = vrot.slane %v558_v12, 1 }
 0x2aa   :  { %v1801_v10 = vpop.f32.mrb[22].mxu0  ;;  %v1872_v15 = vpop.f32.mrb[22].mxu1 }
 0x2ab   :  { %v1803_v32 = vpop.f32.mrb[23].mxu0  ;;  %1877 = vrot.lane.b32.xlu0 %v1801_v10, %s2310_s29  ;;  %v1874_v27 = vpop.f32.mrb[23].mxu1  ;;  %v557_v10 = vld [vmem:[%s3018_s1 + $0x20] sm:$0xe] }
 0x2ac   :  { %1879 = vrot.lane.b32.xlu1 %v1803_v32, %s2310_s29  ;;  %v565_v24 = vrot.slane %v557_v10, 1 }
 0x2af   :  { %1881 = vrot.lane.b32.xlu0 %v1872_v15, %s2310_s29  ;;  %v560_v15 = vld [vmem:[%s3018_s1 + $0x38] sm:$0xe] }
 0x2b0   :  { %1883 = vrot.lane.b32.xlu1 %v1874_v27, %s2310_s29  ;;  %v554_v27 = vld [vmem:[%s3017_s0 + $0x8] sm:$0x7]  ;;  %v568_v3 = vrot.slane %v560_v15, 1 }
 0x2b1   :  { %v574_v26 = vadd.f32 %v566_v23, %v554_v27 }
 0x2b2   :  { %v1968_v30 = vpop.f32.mrb[24].mxu0  ;;  %v2039_v17 = vpop.f32.mrb[24].mxu1 }
 0x2b3   :  { %v1970_v35 = vpop.f32.mrb[25].mxu0  ;;  %2044 = vrot.lane.b32.xlu0 %v1968_v30, %s2312_s30  ;;  %v2041_v4 = vpop.f32.mrb[25].mxu1 }
 0x2b4   :  { %2046 = vrot.lane.b32.xlu1 %v1970_v35, %s2312_s30  ;;  %v567_v35 = vrot.slane %v559_v20, 1  ;;  %v556_v20 = vld [vmem:[%s3017_s0 + $0x18] sm:$0x7] }
 0x2b5   :  { %v576_v34 = vadd.f32 %v568_v3, %v556_v20 }
 0x2b7   :  { %2048 = vrot.lane.b32.xlu0 %v2039_v17, %s2312_s30 }
 0x2b8   :  { %2050 = vrot.lane.b32.xlu1 %v2041_v4, %s2312_s30  ;;  %v555_v4 = vld [vmem:[%s3017_s0 + $0x10] sm:$0x7] }
 0x2b9   :  { %v575_v15 = vadd.f32 %v567_v35, %v555_v4 }
 0x2e5   :  { %v725_v13 = vpop.permute.xlu0 %724 }
 0x2e6   :  { %v727_v40 = vpop.permute.xlu1 %726 }
 0x2e7   :  { %v734_v30 = vsel %vm31_vm0, %v725_v13, %v727_v40 }
 0x2e8   :  { %v737_v2 = vmul.f32 %v734_v30, %v2443_v18  ;;  %v573_v30 = vadd.f32 %v565_v24, %v553_v36 }
 0x2e9   :  { %v729_v41 = vpop.permute.xlu0 %728 }
 0x2ea   :  { %v731_v42 = vpop.permute.xlu1 %730  ;;  %v733_v12 = vsel %vm31_vm0, %v727_v40, %v729_v41  ;;  %v741_v31 = vadd.f32 %v737_v2, %v574_v26 }
 0x2eb   :  { %v735_v38 = vsel %vm31_vm0, %v731_v42, %v725_v13  ;;  %v738_v23 = vmul.f32 %v733_v12, %v2454_v22  ;;  %v732_v18 = vsel %vm31_vm0, %v729_v41, %v731_v42 }
 0x2ec   :  { %v736_v0 = vmul.f32 %v735_v38, %v2451_v21  ;;  %v739_v42 = vmul.f32 %v732_v18, %v2467_v29 }
 0x2ed   :  { %v892_v43 = vpop.permute.xlu0 %891  ;;  %v742_v26 = vadd.f32 %v738_v23, %v575_v15 }
 0x2ee   :  { %v894_v44 = vpop.permute.xlu1 %893  ;;  %v743_v12 = vadd.f32 %v739_v42, %v576_v34 }
 0x2ef   :  { %v901_v40 = vsel %vm70_vm1, %v892_v43, %v894_v44 }
 0x2f0   :  { %v904_v1 = vmul.f32 %v901_v40, %v2446_v19 }
 0x2f1   :  { %v896_v47 = vpop.permute.xlu0 %895 }
 0x2f2   :  { %v898_v50 = vpop.permute.xlu1 %897  ;;  %v900_v27 = vsel %vm70_vm1, %v894_v44, %v896_v47 }
 0x2f3   :  { %v902_v35 = vsel %vm70_vm1, %v898_v50, %v892_v43  ;;  %v905_v36 = vmul.f32 %v900_v27, %v2464_v28  ;;  %v899_v21 = vsel %vm70_vm1, %v896_v47, %v898_v50  ;;  %v740_v43 = vadd.f32 %v736_v0, %v573_v30 }
 0x2f4   :  { %v903_v29 = vmul.f32 %v902_v35, %v2457_v25  ;;  %v908_v47 = vadd.f32 %v904_v1, %v741_v31  ;;  %v906_v50 = vmul.f32 %v899_v21, %v2474_v33  ;;  %v3044_v21 = vld [vmem:[#allocation3_spill] sm:$0xff] }
 0x2f5   :  { %v1059_v51 = vpop.permute.xlu0 %1058  ;;  %v909_v4 = vadd.f32 %v905_v36, %v742_v26 }
 0x2f6   :  { %v1061_v52 = vpop.permute.xlu1 %1060  ;;  %v907_v33 = vadd.f32 %v903_v29, %v740_v43 }
 0x2f7   :  { %v1068_v13 = vsel %vm110_vm2, %v1059_v51, %v1061_v52 }
 0x2f8   :  { %v1071_v19 = vmul.f32 %v1068_v13, %v2498_v56 }
 0x2f9   :  { %v1063_v53 = vpop.permute.xlu0 %1062 }
 0x2fa   :  { %v1065_v63 = vpop.permute.xlu1 %1064  ;;  %v1067_v22 = vsel %vm110_vm2, %v1061_v52, %v1063_v53 }
 0x2fb   :  { %v1069_v3 = vsel %vm110_vm2, %v1065_v63, %v1059_v51  ;;  %v1072_v28 = vmul.f32 %v1067_v22, %v2510_v60  ;;  %v1066_v44 = vsel %vm110_vm2, %v1063_v53, %v1065_v63  ;;  %v1075_v53 = vadd.f32 %v1071_v19, %v908_v47 }
 0x2fc   :  { %v1073_v1 = vmul.f32 %v1066_v44, %v2513_v61  ;;  %v910_v63 = vadd.f32 %v906_v50, %v743_v12 }
 0x2fd   :  { %v1226_v5 = vpop.permute.xlu0 %1225  ;;  %v1076_v31 = vadd.f32 %v1072_v28, %v909_v4 }
 0x2fe   :  { %v1228_v6 = vpop.permute.xlu1 %1227  ;;  %v1077_v23 = vadd.f32 %v1073_v1, %v910_v63 }
 0x2ff   :  { %v1235_v38 = vsel %vm150_vm3, %v1226_v5, %v1228_v6 }
 0x300   :  { %v1238_v52 = vmul.f32 %v1235_v38, %v2502_v57 }
 0x301   :  { %v1230_v11 = vpop.permute.xlu0 %1229 }
 0x302   :  { %v1232_v14 = vpop.permute.xlu1 %1231  ;;  %v1234_v2 = vsel %vm150_vm3, %v1228_v6, %v1230_v11  ;;  %v1070_v6 = vmul.f32 %v1069_v3, %v2507_v59 }
 0x303   :  { %v1236_v56 = vsel %vm150_vm3, %v1232_v14, %v1226_v5  ;;  %v1239_v0 = vmul.f32 %v1234_v2, %v2523_v8  ;;  %v1233_v25 = vsel %vm150_vm3, %v1230_v11, %v1232_v14  ;;  %v1242_v5 = vadd.f32 %v1238_v52, %v1075_v53 }
 0x304   :  { %v1237_v57 = vmul.f32 %v1236_v56, %v2520_v7  ;;  %v1240_v20 = vmul.f32 %v1233_v25, %v2530_v16  ;;  %v1074_v59 = vadd.f32 %v1070_v6, %v907_v33  ;;  %v3050_v6 = vld [vmem:[#allocation6_spill] sm:$0xff] }
 0x305   :  { %v1243_v15 = vadd.f32 %v1239_v0, %v1076_v31  ;;  %v1393_v16 = vadd.f32 %v2859_v58, %v1242_v5 }
 0x306   :  { %v1241_v11 = vadd.f32 %v1237_v57, %v1074_v59  ;;  %v1244_v14 = vadd.f32 %v1240_v20, %v1077_v23  ;;  %v3052_v20 = vld [vmem:[#allocation10_spill] sm:$0xff] }
 0x30d   :  { %v2891_v32 = vpop.permute.xlu0 %1543 }
 0x30e   :  { %v2898_v17 = vpop.permute.xlu1 %1545 }
 0x30f   :  { %v1553_v34 = vsel %vm190_vm4, %v2891_v32, %v2898_v17 }
 0x310   :  { %v1555_v13 = vmul.f32 %v1553_v34, %v2551_v45  ;;  %v1392_v45 = vadd.f32 %v2855_v54, %v1241_v11  ;;  %v3045_v54 = vld [vmem:[#allocation4_spill] sm:$0xff]  ;;  %v3053_v34 = vld [vmem:[#allocation11_spill] sm:$0xff]  ;;  %v3054_v11 = vld [vmem:[#allocation9_spill] sm:$0xff] }
 0x311   :  { %v1548_v37 = vpop.permute.xlu0 %1547 }
 0x312   :  { %v1550_v10 = vpop.permute.xlu1 %1549  ;;  %v1552_v61 = vsel %vm190_vm4, %v2898_v17, %v1548_v37  ;;  %v1394_v17 = vadd.f32 %v2857_v55, %v1243_v15  ;;  %v1559_v19 = vadd.f32 %v1555_v13, %v1392_v45 }
 0x313   :  { %v1551_v7 = vsel %vm190_vm4, %v1548_v37, %v1550_v10  ;;  %v1554_v18 = vsel %vm190_vm4, %v1550_v10, %v2891_v32  ;;  %v1556_v35 = vmul.f32 %v1552_v61, %v2559_v48 }
 0x314   :  { %v1557_v58 = vmul.f32 %v1551_v7, %v2562_v49  ;;  %v1558_v48 = vmul.f32 %v1554_v18, %v2554_v46  ;;  %v1395_v49 = vadd.f32 %v2861_v62, %v1244_v14  ;;  %v3046_v46 = vld [vmem:[#allocation2_spill] sm:$0xff]  ;;  %v3048_v62 = vld [vmem:[#allocation7_spill] sm:$0xff] }
 0x315   :  { %v1711_v41 = vpop.permute.xlu0 %1710  ;;  %v1560_v28 = vadd.f32 %v1556_v35, %v1393_v16 }
 0x316   :  { %v1713_v24 = vpop.permute.xlu1 %1712  ;;  %v1561_v44 = vadd.f32 %v1557_v58, %v1394_v17  ;;  %v1562_v52 = vadd.f32 %v1558_v48, %v1395_v49 }
 0x317   :  { %v1720_v27 = vsel %vm230_vm6, %v1711_v41, %v1713_v24 }
 0x318   :  { %v1722_v55 = vmul.f32 %v1720_v27, %v2614_v39  ;;  %v3047_v39 = vld [vmem:[#allocation5_spill] sm:$0xff] }
 0x319   :  { %v1715_v51 = vpop.permute.xlu0 %1714 }
 0x31a   :  { %v1717_v60 = vpop.permute.xlu1 %1716  ;;  %v1719_v37 = vsel %vm230_vm6, %v1713_v24, %v1715_v51  ;;  %v1726_v56 = vadd.f32 %v1722_v55, %v1559_v19 }
 0x31b   :  { %v1718_v42 = vsel %vm230_vm6, %v1715_v51, %v1717_v60  ;;  %v1721_v32 = vsel %vm230_vm6, %v1717_v60, %v1711_v41  ;;  %v1723_v38 = vmul.f32 %v1719_v37, %v3044_v21  ;;  %v3049_v51 = vld [vmem:[#allocation8_spill] sm:$0xff] }
 0x31c   :  { %v1724_v3 = vmul.f32 %v1718_v42, %v3045_v54  ;;  %v1725_v2 = vmul.f32 %v1721_v32, %v3046_v46  ;;  %v3051_v60 = vld [vmem:[#allocation12_spill] sm:$0xff] }
 0x31d   :  { %v1878_v40 = vpop.permute.xlu0 %1877  ;;  %v1727_v25 = vadd.f32 %v1723_v38, %v1560_v28 }
 0x31e   :  { %v1880_v8 = vpop.permute.xlu1 %1879  ;;  %v1728_v1 = vadd.f32 %v1724_v3, %v1561_v44  ;;  %v1729_v33 = vadd.f32 %v1725_v2, %v1562_v52 }
 0x31f   :  { %v1887_v10 = vsel %vm270_vm5, %v1878_v40, %v1880_v8 }
 0x320   :  { %v1889_v43 = vmul.f32 %v1887_v10, %v3047_v39 }
 0x321   :  { %v1882_v30 = vpop.permute.xlu0 %1881 }
 0x322   :  { %v1884_v22 = vpop.permute.xlu1 %1883  ;;  %v1886_v36 = vsel %vm270_vm5, %v1880_v8, %v1882_v30  ;;  %v1893_v31 = vadd.f32 %v1889_v43, %v1726_v56 }
 0x323   :  { %v1885_v24 = vsel %vm270_vm5, %v1882_v30, %v1884_v22  ;;  %v1888_v41 = vsel %vm270_vm5, %v1884_v22, %v1878_v40  ;;  %v1890_v47 = vmul.f32 %v1886_v36, %v3048_v62 }
 0x324   :  { %v1891_v4 = vmul.f32 %v1885_v24, %v3049_v51  ;;  %v1892_v0 = vmul.f32 %v1888_v41, %v3050_v6 }
 0x325   :  { %v2045_v26 = vpop.permute.xlu0 %2044  ;;  %v1894_v5 = vadd.f32 %v1890_v47, %v1727_v25 }
 0x326   :  { %v2047_v29 = vpop.permute.xlu1 %2046  ;;  %v1895_v8 = vadd.f32 %v1891_v4, %v1728_v1  ;;  %v1896_v23 = vadd.f32 %v1892_v0, %v1729_v33 }
 0x327   :  { %v2054_v50 = vsel %vm310_vm7, %v2045_v26, %v2047_v29 }
 0x328   :  { %v2056_v12 = vmul.f32 %v2054_v50, %v3051_v60 }
 0x329   :  { %v2049_v53 = vpop.permute.xlu0 %2048 }
 0x32a   :  { %v2053_v57 = vsel %vm310_vm7, %v2047_v29, %v2049_v53  ;;  %v2051_v63 = vpop.permute.xlu1 %2050  ;;  %v2060_v14 = vadd.f32 %v2056_v12, %v1893_v31 }
 0x32b   :  { %v2057_v40 = vmul.f32 %v2053_v57, %v3052_v20  ;;  %v2052_v59 = vsel %vm310_vm7, %v2049_v53, %v2051_v63  ;;  %v2055_v15 = vsel %vm310_vm7, %v2051_v63, %v2045_v26 }
 0x32c   :  { %v2058_v61 = vmul.f32 %v2052_v59, %v3053_v34  ;;  %v2059_v7 = vmul.f32 %v2055_v15, %v3054_v11 }
 0x32d   :  { %v2061_v16 = vadd.f32 %v2057_v40, %v1894_v5 }
 0x32e   :  { %v2062_v18 = vadd.f32 %v2058_v61, %v1895_v8  ;;  %v2063_v27 = vadd.f32 %v2059_v7, %v1896_v23 }
 0x32f   :  { %v2068_v30 = vcombine.low %v2060_v14, %v2061_v16 }
 0x330   :  { %v2069_v13 = vcombine.low %v2062_v18, %v2063_v27 }
 0x331   :  { %2072 = vst [vmem:[%s3021_s4] sm:$0x77] %v2068_v30 }
 0x332   :  { %2073 = vst [vmem:[%s3021_s4 + $0x8] sm:$0x77] %v2069_v13 }

</bundles_post_ra>
